<compile_context>
chip_gen: v6e
topology: v6e:2x2x1
jax: 0.10.0
libtpu: 0.0.40
codegen_flags: <defaults>
</compile_context>

<pallas_src>
import numpy as np
import jax
import jax.numpy as jnp
from jax import lax
from jax.experimental import pallas as pl
from jax.experimental.pallas import tpu as pltpu


# ----------------------------------------------------------------------------
# DynamicPosBias MLP (parameter / bias generation -- plain-JAX glue)
# ----------------------------------------------------------------------------
# TODO(synk): DynamicPosBiasV3's source is not included in the provided file;
# we use the canonical DynamicPosBias architecture from the same repo:
# Linear(1->dpb_dim) followed by 3x [LayerNorm, ReLU, Linear], last Linear -> h.

def _layer_norm(x, gamma, beta, eps=1e-5):
    mu = jnp.mean(x, axis=-1, keepdims=True)
    var = jnp.mean((x - mu) ** 2, axis=-1, keepdims=True)
    return (x - mu) * jax.lax.rsqrt(var + eps) * gamma + beta


def init_dpb_params(key, dpb_dim, h):
    ks = jax.random.split(key, 4)

    def lin(k, fan_in, fan_out):
        w = jax.random.normal(k, (fan_in, fan_out), jnp.float32) / np.sqrt(fan_in)
        b = jnp.zeros((fan_out,), jnp.float32)
        return w, b

    p = {}
    p["proj_w"], p["proj_b"] = lin(ks[0], 1, dpb_dim)
    p["w1"], p["b1"] = lin(ks[1], dpb_dim, dpb_dim)
    p["w2"], p["b2"] = lin(ks[2], dpb_dim, dpb_dim)
    p["w3"], p["b3"] = lin(ks[3], dpb_dim, h)
    for i in (1, 2, 3):
        p[f"ln{i}_g"] = jnp.ones((dpb_dim,), jnp.float32)
        p[f"ln{i}_b"] = jnp.zeros((dpb_dim,), jnp.float32)
    return p


def dpb_forward(p, x):
    # x: (L, D, 1) -> (L, D, h)
    y = x @ p["proj_w"] + p["proj_b"]
    y = _layer_norm(y, p["ln1_g"], p["ln1_b"])
    y = jax.nn.relu(y) @ p["w1"] + p["b1"]
    y = _layer_norm(y, p["ln2_g"], p["ln2_b"])
    y = jax.nn.relu(y) @ p["w2"] + p["b2"]
    y = _layer_norm(y, p["ln3_g"], p["ln3_b"])
    y = jax.nn.relu(y) @ p["w3"] + p["b3"]
    return y


def dpb_transform(p, x):
    # rearrange 'n d h -> h n d'
    return jnp.transpose(dpb_forward(p, x), (2, 0, 1))


# ----------------------------------------------------------------------------
# Module "parameters" (pos / neg / zero index tensors), par_type == 1
# ----------------------------------------------------------------------------
def get_pos(n, dim):
    return (jnp.arange(1, 1 + n * dim, dtype=jnp.float32)
            .reshape(n, dim, 1) / float(n * dim))


def get_neg(n, dim):
    idx = jnp.arange(1, 1 + n * dim, dtype=jnp.float32)
    return -jnp.flip(idx, axis=0).reshape(n, dim, 1) / float(n * dim)


def get_zero(dim):
    return jnp.zeros((1, dim, 1), jnp.float32)


def build_a(p, pos_param, neg_param, zero_param, n_x, n_max, h, dim):
    """Replicates forward()'s construction of a = cat([zero, pos, zero, neg])."""
    zero = dpb_transform(p, zero_param)             # (h, 1, dim)
    l1 = min(n_x - 1, n_max - 1)
    l2 = max(0, n_x - 1 - l1)
    pos_dpb = dpb_transform(p, pos_param[:l1])      # (h, l1, dim)
    neg_dpb = dpb_transform(p, neg_param[:l1])      # (h, l1, dim)  (non-causal)
    zero_value = 0.0                                # use_exp == False
    fill = jnp.full((h, l2, dim), zero_value, jnp.float32)
    pos = jnp.concatenate([pos_dpb, fill], axis=-2)      # (h, n_x-1, dim)
    neg = jnp.concatenate([fill, neg_dpb], axis=-2)      # (h, n_x-1, dim)
    a = jnp.concatenate([zero, pos, zero, neg], axis=1)  # (h, 2*n_x, dim)
    return a


# ----------------------------------------------------------------------------
# Pallas kernel: depthwise Toeplitz convolution along the sequence axis.
#
#   out[m, c] = sum_{k=0}^{Np-1} x[k, c] * taps[m - k + Np - 1, c]
#
# with channels c = (h, d) packed on the lane axis and taps[t, (h,d)] =
# a[h, (t - (Np-1)) mod 2N, d].  One grid step = one (TM, Cp) output tile.
# ----------------------------------------------------------------------------
_KG = 8  # k-group size (sublane granule)


def toeplitz_conv_kernel(taps_ref, x_ref, o_ref):
    # taps_ref: (2*Np, Cp)   x_ref: (Np, Cp)   o_ref: (TM, Cp)
    tm, cp = o_ref.shape
    np_len = x_ref.shape[0]
    m0 = pl.multiple_of(pl.program_id(1) * tm, _KG)

    def group_body(kg, acc):
        kbase = pl.multiple_of(kg * _KG, _KG)
        # Aligned slab covering the _KG shifts of this k-group:
        #   slab[i] = taps[m0 - kbase + Np - _KG + i],  i in [0, TM + _KG)
        slab_start = pl.multiple_of(m0 - kbase + np_len - _KG, _KG)
        slab = taps_ref[pl.ds(slab_start, tm + _KG), :].astype(jnp.float32)
        xg = x_ref[pl.ds(kbase, _KG), :].astype(jnp.float32)
        # 8-wide static unroll; u = (_KG - 1) - r is the slab row offset so
        # that slab[u + m_rel] == taps[(m0 + m_rel) - (kbase + r) + Np - 1].
        for u in range(_KG):
            r = _KG - 1 - u
            acc = acc + slab[u:u + tm, :] * xg[r:r + 1, :]
        return acc

    acc = jnp.zeros((tm, cp), jnp.float32)
    acc = lax.fori_loop(0, np_len // _KG, group_body, acc)
    o_ref[...] = acc.astype(o_ref.dtype)


def toeplitz_apply(x, a, *, tm=8):
    """x: (B, H, N, D), a: (H, 2N, D) -> (B, H, N, D)."""
    B, H, N, D = x.shape
    assert tm % _KG == 0
    lane = 128
    C = H * D
    cp = ((C + lane - 1) // lane) * lane          # lane-dense channel count
    npad = ((N + tm - 1) // tm) * tm              # sequence padded to m-tiles

    # Lane-dense input: (B, Np, Cp) with (h, d) flattened onto the lane axis.
    x_l = jnp.transpose(x, (0, 2, 1, 3)).reshape(B, N, C)
    x_l = jnp.pad(x_l, ((0, 0), (0, npad - N), (0, cp - C)))

    # Shift-indexed tap table: taps[t, (h,d)] = a[h, (t - (Np-1)) mod 2N, d].
    t_idx = (np.arange(2 * npad) - (npad - 1)) % (2 * N)
    taps = jnp.transpose(a[:, t_idx, :], (1, 0, 2)).reshape(2 * npad, C)
    taps = jnp.pad(taps, ((0, 0), (0, cp - C)))

    out = pl.pallas_call(
        toeplitz_conv_kernel,
        out_shape=jax.ShapeDtypeStruct((B, npad, cp), x.dtype),
        grid=(B, npad // tm),
        in_specs=[
            # taps: one full block, block index constant -> fetched once.
            pl.BlockSpec((2 * npad, cp), lambda b, mi: (0, 0)),
            # x: full sequence for batch b, re-fetched only when b changes.
            pl.BlockSpec((None, npad, cp), lambda b, mi: (b, 0, 0)),
        ],
        out_specs=pl.BlockSpec((None, tm, cp), lambda b, mi: (b, mi, 0)),
        compiler_params=pltpu.CompilerParams(
            dimension_semantics=("parallel", "parallel"),
            vmem_limit_bytes=48 * 1024 * 1024,
        ),
    )(taps, x_l)

    out = out[:, :N, :C].reshape(B, N, H, D).transpose(0, 2, 1, 3)
    return out


def dynamic_toeplitz_multihead_v3_forward(params, x, h, n_max, dim):
    """Forward pass (dim=-2, normalize=False) of DynamicToepliztMultiheadV3."""
    n_x = x.shape[-2]
    a = build_a(params["dpb"], params["pos"], params["neg"], params["zero"],
                n_x, n_max, h, dim)                        # (h, 2*n_x, dim)
    return toeplitz_apply(x, a), a


# ----------------------------------------------------------------------------
if __name__ == "__main__":
    # Module hyper-params (small, but exercising multiple m-tiles / k-groups).
    H, N_MAX, DIM, DPB_DIM = 2, 16, 4, 16
    B, N = 2, 16  # input: batch, sequence length (== N_MAX here)

    key = jax.random.PRNGKey(0)
    k_x, k_p = jax.random.split(key)
    x = jax.random.normal(k_x, (B, H, N, DIM), jnp.float32)

    params = {
        "dpb": init_dpb_params(k_p, DPB_DIM, H),
        "pos": get_pos(N_MAX, DIM),
        "neg": get_neg(N_MAX, DIM),
        "zero": get_zero(DIM),
    }

    out, a = dynamic_toeplitz_multihead_v3_forward(params, x, H, N_MAX, DIM)
    out = jax.block_until_ready(out)

    # Reference: direct evaluation of the 2N-point circular convolution that
    # torch.fft.rfft/irfft compute (first N outputs kept; 'ortho' norms cancel).
    a_np = np.asarray(a)
    x_np = np.asarray(x)
    ref = np.zeros((B, H, N, DIM), np.float64)
    for m in range(N):
        for k in range(N):
            ref[:, :, m, :] += x_np[:, :, k, :] * a_np[:, (m - k) % (2 * N), :]

    np.testing.assert_allclose(np.asarray(out), ref, rtol=1e-4, atol=1e-4)
    print("KERNEL_OK")
</pallas_src>

<mosaic_0001>
module attributes {stable_mosaic.version = 11 : i64} {
  func.func @toeplitz_conv_kernel(%arg0: i32, %arg1: i32, %arg2: memref<32x128xf32, #tpu.memory_space<vmem>>, %arg3: memref<1x16x128xf32, #tpu.memory_space<vmem>>, %arg4: memref<1x8x128xf32, #tpu.memory_space<vmem>>) attributes {dimension_semantics = [#tpu.dimension_semantics<parallel>, #tpu.dimension_semantics<parallel>], iteration_bounds = array<i64: 2, 2>, scalar_prefetch = 0 : i64, scratch_operands = 0 : i64, tpu.core_type = #tpu.core_type<tc>, window_params = [{pipeline_mode = #tpu.pipeline_mode<synchronous>, transform_indices = @transform_0, window_bounds = array<i64: 32, 128>}, {transform_indices = @transform_1, window_bounds = array<i64: 1, 16, 128>}, {transform_indices = @transform_2, window_bounds = array<i64: 1, 8, 128>}]} {
    %c8_i32 = arith.constant 8 : i32
    %0 = arith.muli %arg1, %c8_i32 : i32
    %1 = tpu.assume_multiple %0, 8 : i32
    %cst = arith.constant 0.000000e+00 : f32
    %2 = vector.broadcast %cst : f32 to vector<8x128xf32>
    %c0_i32 = arith.constant 0 : i32
    %c2_i32 = arith.constant 2 : i32
    %3 = arith.addi %c0_i32, %c2_i32 : i32
    %c1_i32 = arith.constant 1 : i32
    %4 = scf.for %arg5 = %c0_i32 to %3 step %c1_i32 iter_args(%arg6 = %2) -> (vector<8x128xf32>)  : i32 {
      %c8_i32_3 = arith.constant 8 : i32
      %8 = arith.muli %arg5, %c8_i32_3 : i32
      %9 = tpu.assume_multiple %8, 8 : i32
      %10 = arith.subi %1, %9 : i32
      %c16_i32 = arith.constant 16 : i32
      %11 = arith.addi %10, %c16_i32 : i32
      %c8_i32_4 = arith.constant 8 : i32
      %12 = arith.subi %11, %c8_i32_4 : i32
      %13 = tpu.assume_multiple %12, 8 : i32
      %14 = arith.index_cast %13 : i32 to index
      %c0_5 = arith.constant 0 : index
      %15 = vector.load %arg2[%14, %c0_5] : memref<32x128xf32, #tpu.memory_space<vmem>>, vector<16x128xf32>
      %c0_6 = arith.constant 0 : index
      %16 = arith.index_cast %9 : i32 to index
      %c0_7 = arith.constant 0 : index
      %17 = vector.load %arg3[%c0_6, %16, %c0_7] : memref<1x16x128xf32, #tpu.memory_space<vmem>>, vector<1x8x128xf32>
      %18 = vector.shape_cast %17 : vector<1x8x128xf32> to vector<8x128xf32>
      %19 = vector.extract_strided_slice %15 {offsets = [0, 0], sizes = [8, 128], strides = [1, 1]} : vector<16x128xf32> to vector<8x128xf32>
      %20 = vector.extract_strided_slice %18 {offsets = [7, 0], sizes = [1, 128], strides = [1, 1]} : vector<8x128xf32> to vector<1x128xf32>
      %21 = vector.broadcast %20 : vector<1x128xf32> to vector<8x128xf32>
      %22 = arith.mulf %19, %21 : vector<8x128xf32>
      %23 = arith.addf %arg6, %22 : vector<8x128xf32>
      %24 = vector.extract_strided_slice %15 {offsets = [1, 0], sizes = [8, 128], strides = [1, 1]} : vector<16x128xf32> to vector<8x128xf32>
      %25 = vector.extract_strided_slice %18 {offsets = [6, 0], sizes = [1, 128], strides = [1, 1]} : vector<8x128xf32> to vector<1x128xf32>
      %26 = vector.broadcast %25 : vector<1x128xf32> to vector<8x128xf32>
      %27 = arith.mulf %24, %26 : vector<8x128xf32>
      %28 = arith.addf %23, %27 : vector<8x128xf32>
      %29 = vector.extract_strided_slice %15 {offsets = [2, 0], sizes = [8, 128], strides = [1, 1]} : vector<16x128xf32> to vector<8x128xf32>
      %30 = vector.extract_strided_slice %18 {offsets = [5, 0], sizes = [1, 128], strides = [1, 1]} : vector<8x128xf32> to vector<1x128xf32>
      %31 = vector.broadcast %30 : vector<1x128xf32> to vector<8x128xf32>
      %32 = arith.mulf %29, %31 : vector<8x128xf32>
      %33 = arith.addf %28, %32 : vector<8x128xf32>
      %34 = vector.extract_strided_slice %15 {offsets = [3, 0], sizes = [8, 128], strides = [1, 1]} : vector<16x128xf32> to vector<8x128xf32>
      %35 = vector.extract_strided_slice %18 {offsets = [4, 0], sizes = [1, 128], strides = [1, 1]} : vector<8x128xf32> to vector<1x128xf32>
      %36 = vector.broadcast %35 : vector<1x128xf32> to vector<8x128xf32>
      %37 = arith.mulf %34, %36 : vector<8x128xf32>
      %38 = arith.addf %33, %37 : vector<8x128xf32>
      %39 = vector.extract_strided_slice %15 {offsets = [4, 0], sizes = [8, 128], strides = [1, 1]} : vector<16x128xf32> to vector<8x128xf32>
      %40 = vector.extract_strided_slice %18 {offsets = [3, 0], sizes = [1, 128], strides = [1, 1]} : vector<8x128xf32> to vector<1x128xf32>
      %41 = vector.broadcast %40 : vector<1x128xf32> to vector<8x128xf32>
      %42 = arith.mulf %39, %41 : vector<8x128xf32>
      %43 = arith.addf %38, %42 : vector<8x128xf32>
      %44 = vector.extract_strided_slice %15 {offsets = [5, 0], sizes = [8, 128], strides = [1, 1]} : vector<16x128xf32> to vector<8x128xf32>
      %45 = vector.extract_strided_slice %18 {offsets = [2, 0], sizes = [1, 128], strides = [1, 1]} : vector<8x128xf32> to vector<1x128xf32>
      %46 = vector.broadcast %45 : vector<1x128xf32> to vector<8x128xf32>
      %47 = arith.mulf %44, %46 : vector<8x128xf32>
      %48 = arith.addf %43, %47 : vector<8x128xf32>
      %49 = vector.extract_strided_slice %15 {offsets = [6, 0], sizes = [8, 128], strides = [1, 1]} : vector<16x128xf32> to vector<8x128xf32>
      %50 = vector.extract_strided_slice %18 {offsets = [1, 0], sizes = [1, 128], strides = [1, 1]} : vector<8x128xf32> to vector<1x128xf32>
      %51 = vector.broadcast %50 : vector<1x128xf32> to vector<8x128xf32>
      %52 = arith.mulf %49, %51 : vector<8x128xf32>
      %53 = arith.addf %48, %52 : vector<8x128xf32>
      %54 = vector.extract_strided_slice %15 {offsets = [7, 0], sizes = [8, 128], strides = [1, 1]} : vector<16x128xf32> to vector<8x128xf32>
      %55 = vector.extract_strided_slice %18 {offsets = [0, 0], sizes = [1, 128], strides = [1, 1]} : vector<8x128xf32> to vector<1x128xf32>
      %56 = vector.broadcast %55 : vector<1x128xf32> to vector<8x128xf32>
      %57 = arith.mulf %54, %56 : vector<8x128xf32>
      %58 = arith.addf %53, %57 : vector<8x128xf32>
      scf.yield %58 : vector<8x128xf32>
    }
    %c2_i32_0 = arith.constant 2 : i32
    %c0 = arith.constant 0 : index
    %c0_1 = arith.constant 0 : index
    %c0_2 = arith.constant 0 : index
    %5 = vector.load %arg4[%c0, %c0_1, %c0_2] : memref<1x8x128xf32, #tpu.memory_space<vmem>>, vector<1x8x128xf32>
    %6 = vector.shape_cast %5 : vector<1x8x128xf32> to vector<8x128xf32>
    %7 = vector.shape_cast %4 : vector<8x128xf32> to vector<1x8x128xf32>
    tpu.vector_store %arg4[%c0, %c0_1, %c0_2], %7 {strides = array<i32>} : memref<1x8x128xf32, #tpu.memory_space<vmem>>, vector<1x8x128xf32>,
    return
  }
  func.func @transform_0(%arg0: i32, %arg1: i32) -> (i32, i32) {
    %c0_i32 = arith.constant 0 : i32
    %c0_i32_0 = arith.constant 0 : i32
    %c0_i32_1 = arith.constant 0 : i32
    return %c0_i32, %c0_i32_0 : i32, i32
  }
  func.func @transform_1(%arg0: i32, %arg1: i32) -> (i32, i32, i32) {
    %c0_i32 = arith.constant 0 : i32
    %c0_i32_0 = arith.constant 0 : i32
    %c0_i32_1 = arith.constant 0 : i32
    return %arg0, %c0_i32, %c0_i32_0 : i32, i32, i32
  }
  func.func @transform_2(%arg0: i32, %arg1: i32) -> (i32, i32, i32) {
    %c0_i32 = arith.constant 0 : i32
    %c0_i32_0 = arith.constant 0 : i32
    return %arg0, %arg1, %c0_i32 : i32, i32, i32
  }
}

</mosaic_0001>

<bundles_post_ra>
// kernel: tpu_custom_call.1
= control target key start
LH: loop header
LB: loop body
LE: loop exit
PB: predicated region body
PF: predicated region fallthrough
CT: control target
= control target key end

     0   :  { %s1050_s0 = inlined_call_operand.hbm [shape: f32[32,128], index: 0, kind: input, shape index: {}]   ;;  %s1051_s1 = inlined_call_operand.hbm [shape: f32[2,16,128], index: 1, kind: input, shape index: {}]   ;;  %s1052_s2 = inlined_call_operand.hbm [shape: f32[2,16,128], index: 2, kind: output, shape index: {}]  }
   0x1   :  { %1061 = sst [smem:[#allocation16_spill]] %s1050_s0 }
   0x2   :  { %7 = vsyncpa [#allocation3], 0 }
   0x3   :  { %8 = vsyncpa [#allocation6], 0 }
   0x4   :  { %10 = vsyncpa [#allocation6 + $0x1], 0 }
   0x5   :  { %11 = vsyncpa [#allocation4], 0 }
   0x6   :  { %13 = vsyncpa [#allocation4 + $0x1], 0  ;;  %s804_s9 = smov 0   ;;  %s806_s10 = smov 0  }
   0x7   :  { %s808_s11 = smov 0   ;;  %s810_s12 = smov 0  }
   0x8   :  { %s812_s13 = smov 0   ;;  %s814_s14 = smov 0  }
   0x9   :  { %s816_s15 = smov 0   ;;  %s818_s16 = smov 0  }
   0xa   :  { %s820_s17 = smov 0   ;;  %s822_s18 = smov 0  }
   0xb   :  { %s824_s19 = smov 0  }
   0xc LB: > { %1062 = sst [smem:[#allocation11_spill]] %s734_s9  ;;  %s435_s20 = sadd.s32 4294967295, %s774_s19   ;;  %s774_s19 = sphi %s824_s19, %s19_s19   ;;  %s770_s18 = sphi %s822_s18, %s1092_s18   ;;  %s766_s17 = sphi %s820_s17, %s1083_s17   ;;  %s762_s16 = sphi %s818_s16, %s1091_s16   ;;  %s758_s15 = sphi %s816_s15, %s1082_s15   ;;  %s754_s14 = sphi %s814_s14, %s1090_s14   ;;  %s750_s13 = sphi %s812_s13, %s1089_s13   ;;  %s746_s12 = sphi %s810_s12, %s1088_s12   ;;  %s742_s11 = sphi %s808_s11, %s1087_s11   ;;  %s738_s10 = sphi %s806_s10, %s1086_s10   ;;  %s734_s9 = sphi %s804_s9, %s1085_s9  }
   0xd   : > { %1063 = sst [smem:[#allocation12_spill]] %s766_s17  ;;  %s436_s21 = sadd.s32 4294967294, %s774_s19  }
   0xe   : > { %p72_p0 = scmp.ne.s32.totalorder %s750_s13, %s746_s12  ;;  %p860_p1 = scmp.eq.s32.totalorder %s435_s20, 0 }
   0xf   : > { %s87_s23 = sadd.s32 1, %s742_s11  ;;  %p97_p2 = scmp.ne.s32.totalorder %s742_s11, %s738_s10 }
  0x10   : > { %p869_p3 = por %p860_p1, %p72_p0  ;;  %p98_p4 = scmp.eq.s32.totalorder %s435_s20, 3 }
  0x11   : > { %p103_p5 = scmp.ne.s32.totalorder %s738_s10, %s734_s9  ;;  %p104_p6 = scmp.eq.s32.totalorder %s436_s21, 3 }
  0x12   : > { %p875_p7 = por %p98_p4, %p97_p2  ;;  %p437_p8 = scmp.ge.s32.totalorder %s774_s19, 1 }
  0x13   : > { %p880_p9 = por %p104_p6, %p103_p5  ;;  %p111_p10 = scmp.lt.s32.totalorder %s774_s19, 5 }
  0x14   : > { %s1066_s25 = scalar_select %p875_p7, 1, 0 }
  0x15   : > { %s1067_s26 = scalar_select %p880_p9, 1, 0 }
  0x16   : > { %p885_p11 = pnand %p437_p8, %p111_p10  ;;  %s784_s28 = smov [#allocation2]  }
  0x17   : > { %1068 = sst [smem:[#allocation13_spill]] %s1067_s26  ;;  %s123_s29 = sshll.u32 %s784_s28, 4  ;;  %s124_s29 = int_to_ptr.vmem [resolvable:$true] %s123_s29 }
  0x18   : > { %p465_p12 = pneg %p885_p11  ;;  %s599_s30 = scalar_lea.vmem %s124_s29, 512 }
  0x19   : > { %p600_p2 = scmp.ne.s32.totalorder %s124_s29, %s599_s30  ;;  %p607_p6 = scmp.lt.s32.totalorder %s124_s29, %s124_s29 }
  0x1a   : > { %p466_p13 = pnand %p465_p12, %p860_p1  ;;  %p608_p9 = scmp.lt.s32.totalorder %s599_s30, %s599_s30 }
  0x1c   : > { %p590_p0 = pneg %p466_p13  ;;  %p609_p7 = por %p608_p9, %p607_p6 }
  0x1e   : > { %p602_p4 = pnand %p600_p2, %p590_p0 }
  0x20   : > { %p603_p5 = pneg %p602_p4 }
  0x22   : > { %p610_p8 = pnand %p609_p7, %p603_p5 }
  0x24   : > { %613 = shalt.err (!%p610_p8)
}
  0x25   : > { %s1054_s3 = smov 128   ;;  %s1055_s4 = smov 8  }
  0x26   : > { %s1070_s0 = sld [smem:[#allocation16_spill]]  ;;  %s28_s7 = sadd.s32 1, %s766_s17 }
  0x27   : > { %p29_p7 = scmp.ge.s32.totalorder %s28_s7, 2  ;;  %s31_s8 = sadd.s32 1, %s770_s18 }
  0x28   : > { %s59_s12 = sadd.s32 1, %s754_s14  ;;  %p66_p9 = scmp.ne.s32.totalorder %s754_s14, %s750_s13 }
  0x29   : > { %s1094_s7 = smov (%p29_p7, %s28_s7), 0  ;;  %s1096_s8 = smov (!%p29_p7, %s31_s8), %s770_s18 }
  0x2a   : > { %1071 = sst [smem:[#allocation14_spill]] %s1094_s7  ;;  %p67_p10 = scmp.eq.s32.totalorder %s774_s19, 0 }
  0x2b   : > { %s83_s20 = ssub.s32 %s766_s17, %s1094_s7  ;;  %p33_p12 = scmp.ge.s32.totalorder %s1096_s8, 2 }
  0x2c   : > { %468 = dma.hbm_to_vmem [thread:$0]  (!%p466_p13), %s1070_s0, 512, %s124_s29, [#allocation3], %s1054_s3, %s1054_s3, %s1055_s4  }
  0x2d   : > { %p478_p0 = scmp.lt.s32.totalorder %s774_s19, 4  ;;  %p911_p13 = por %p67_p10, %p66_p9 }
  0x2e   : > { %s137_s28 = sand.u32 1, %s754_s14   ;;  %s1098_s8 = smov (%p33_p12, %s1096_s8), 0 }
  0x2f   : > { %1073 = sst [smem:[#allocation15_spill]] %s1098_s8  ;;  %s440_s29 = sshll.u32 %s137_s28, 4 }
  0x30   : > { %s56_s30 = ssub.s32 %s770_s18, %s1098_s8  ;;  %s456_s6 = sshll.u32 %s770_s18, 8 }
  0x31   : > { %p57_p2 = scmp.eq.s32.totalorder %s56_s30, 0  ;;  %s84_s5 = sor.u32 %s83_s20, %s56_s30 }
  0x32   : > { %p85_p4 = scmp.eq.s32.totalorder %s84_s5, 0  ;;  %s147_s17 = scalar_lea.hbm %s1051_s1, %s456_s6 }
  0x33   : > { %s922_s3 = scalar_select %p57_p2, %s754_s14, %s59_s12  }
  0x34   : > { %s927_s4 = scalar_select %p85_p4, %s742_s11, %s87_s23  }
  0x35   : > { %s141_s26 = scalar_lea.vmem [#allocation5], %s440_s29  ;;  %p936_p5 = pnand %p478_p0, %p911_p13 }
  0x36   : > { %s148_s9 = sshll.u32 %s141_s26, 4  ;;  %s138_s20 = scalar_lea.sflag [#allocation6], %s137_s28  ;;  %s149_s9 = int_to_ptr.vmem [resolvable:$true] %s148_s9 }
  0x37   : > { %p616_p6 = pneg %p936_p5  ;;  %s627_s12 = scalar_lea.vmem %s149_s9, 256 }
  0x38   : > { %p628_p8 = scmp.ne.s32.totalorder %s149_s9, %s627_s12  ;;  %s787_s23 = smov [#allocation5]  }
  0x39   : > { %s632_s0 = sshll.u32 %s787_s23, 4  ;;  %s633_s0 = int_to_ptr.vmem [resolvable:$false] %s632_s0 }
  0x3a   : > { %p630_p7 = pnand %p628_p8, %p616_p6  ;;  %s634_s7 = scalar_lea.vmem %s633_s0, 512 }
  0x3b   : > { %p635_p10 = scmp.lt.s32.totalorder %s149_s9, %s633_s0  ;;  %p636_p12 = scmp.lt.s32.totalorder %s634_s7, %s627_s12 }
  0x3c   : > { %p631_p9 = pneg %p630_p7 }
  0x3d   : > { %p637_p2 = por %p636_p12, %p635_p10 }
  0x3f   : > { %p638_p4 = pnand %p637_p2, %p631_p9 }
  0x41   : > { %641 = shalt.err (!%p638_p4)
}
  0x42   : > { %s1075_s26 = smov 8   ;;  %s1076_s21 = smov 128  }
  0x43   : > { %472 = dma.hbm_to_vmem [thread:$0]  (!%p936_p5), %s147_s17, 256, %s149_s9, %s138_s20, %s1076_s21, %s1076_s21, %s1075_s26  }
  0x44   : > { %160 = sbr.rel (%p885_p11) target bundleno = 121 (0x79), region = 28 }
  0x49   : > { %721 = dma.done.wait (%p860_p1), [#allocation3], 512  }
  0x4a   : > { %723 = vsyncadd (%p860_p1), [#allocation3], 4294966784  ;;  %s166_s28 = sand.u32 1, %s750_s13  }
  0x4b   : > { %s954_s29 = sshll.u32 %s166_s28, 4  ;;  %s167_s8 = scalar_lea.sflag [#allocation6], %s166_s28 }
  0x4c   : > { %s170_s30 = scalar_lea.vmem [#allocation5], %s954_s29 }
  0x4d   : > { %725 = dma.done.wait (%p869_p3), %s167_s8, 256  }
  0x4e   : > { %727 = vsyncadd (%p869_p3), %s167_s8, 4294967040  ;;  %s188_s9 = sand.u32 1, %s738_s10   ;;  %s447_s17 = sshll.u32 %s758_s15, 3  ;;  %v968_v0 = vmov 0.0  }
  0x4f   : > { %s965_s22 = sshll.u32 %s188_s9, 3  ;;  %s970_s5 = smov 0  }
  0x50   : > { %s190_s27 = scalar_lea.vmem [#allocation7], %s965_s22 }
  0x51 LB: >> { %v207_v1 = vlaneseq  ;;  %s448_s24 = sshll.u32 %s782_s5, 3  ;;  %vm221_vm0 = vcmask 1046528   ;;  %vm235_vm1 = vcmask 1045504   ;;  %vm249_vm2 = vcmask 1044480   ;;  %s197_s5 = sadd.s32 1, %s782_s5   ;;  %s782_s5 = sphi %s970_s5, %s197_s5   ;;  %v778_v0 = vphi %v968_v0, %v1077_v0  }
  0x52   : >> { %s200_s6 = ssub.s32 %s447_s17, %s448_s24  ;;  %s205_s20 = scalar_lea.vmem %s170_s30, %s448_s24 [#allocation5]  ;;  %vm263_vm3 = vcmask 1043456   ;;  %vm277_vm4 = vcmask 1042432   ;;  %vm291_vm5 = vcmask 1041408   ;;  %vm305_vm6 = vcmask 1040384  }
  0x53   : >> { %v208_v2 = vshrl.u32 %v207_v1, 7  ;;  %v206_v3 = vld [vmem:[%s205_s20] sm:$0xff]  ;;  %s369_s12 = scalar_lea.vmem [#allocation2], %s200_s6  ;;  %p194_p1 = scmp.ge.s32.totalorder %s197_s5, 2  }
  0x54   : >> { %v449_v8 = vld [vmem:[%s369_s12 + $0x8] sm:$0xff]  ;;  %v450_v9 = vld [vmem:[%s369_s12 + $0x10] sm:$0xff]  ;;  %s452_s23 = sshll.u32 (%p194_p1), %s762_s16, 1  ;;  %s328_s7 = sshll.u32 (%p194_p1), %s190_s27, 4  ;;  %s329_s7 = int_to_ptr.vmem [resolvable:$true] %s328_s7 }
  0x55   : >> { %v209_v4 = vsub.s32 7, %v208_v2  ;;  %v215_v5 = vsub.s32 6, %v208_v2  ;;  %v229_v6 = vsub.s32 5, %v208_v2  ;;  %v243_v7 = vsub.s32 4, %v208_v2  ;;  %s324_s0 = sadd.s32 (%p194_p1), %s758_s15, %s452_s23  ;;  %s313_s5 = scalar_lea.sflag (%p194_p1), [#allocation4], %s188_s9 }
  0x56   : >> { %v257_v10 = vsub.s32 3, %v208_v2  ;;  %v271_v11 = vsub.s32 2, %v208_v2  ;;  %v285_v12 = vsub.s32 1, %v208_v2  ;;  %v299_v13 = vsub.s32 0, %v208_v2  ;;  %s453_s26 = sshll.u32 (%p194_p1), %s324_s0, 7  ;;  %s642_s29 = scalar_lea.vmem (%p194_p1), %s329_s7, 128 }
  0x57   : >> { %v210_v14 = vrot.slane %v206_v3, %v209_v4  ;;  %v216_v15 = vrot.slane %v206_v3, %v215_v5  ;;  %v230_v16 = vrot.slane %v206_v3, %v229_v6  ;;  %v244_v17 = vrot.slane %v206_v3, %v243_v7  ;;  %s326_s8 = scalar_lea.hbm (%p194_p1), %s1052_s2, %s453_s26  ;;  %p643_p3 = scmp.ne.s32.totalorder (%p194_p1), %s329_s7, %s642_s29 }
  0x58   : >> { %v258_v18 = vrot.slane %v206_v3, %v257_v10  ;;  %v272_v19 = vrot.slane %v206_v3, %v271_v11  ;;  %v286_v20 = vrot.slane %v206_v3, %v285_v12  ;;  %v300_v21 = vrot.slane %v206_v3, %v299_v13  ;;  %p1078_p11 = scmp.ne.s32.totalorder (%p194_p1), %s1066_s25, 0  ;;  %s788_s30 = smov (%p194_p1), [#allocation7]  }
  0x59   : >> { %v211_v22 = vmul.f32 %v449_v8, %v210_v14  ;;  %v217_v23 = vmul.f32 %v449_v8, %v216_v15  ;;  %v218_v24 = vmul.f32 %v450_v9, %v216_v15  ;;  %v231_v25 = vmul.f32 %v449_v8, %v230_v16  ;;  %s646_s17 = sshll.u32 (%p194_p1), %s788_s30, 4  ;;  %s647_s17 = int_to_ptr.vmem [resolvable:$false] %s646_s17 }
  0x5a   : >> { %v232_v26 = vmul.f32 %v450_v9, %v230_v16  ;;  %v245_v27 = vmul.f32 %v449_v8, %v244_v17  ;;  %v246_v28 = vmul.f32 %v450_v9, %v244_v17  ;;  %v259_v29 = vmul.f32 %v449_v8, %v258_v18  ;;  %p644_p0 = pnand (%p194_p1), %p643_p3, %p1078_p11  ;;  %s648_s16 = scalar_lea.vmem (%p194_p1), %s647_s17, 256 }
  0x5b   : >> { %v212_v30 = vadd.f32 %v778_v0, %v211_v22  ;;  %v222_v31 = vrot.slane %v217_v23, 1  ;;  %v223_v32 = vrot.slane %v218_v24, 1  ;;  %v236_v33 = vrot.slane %v231_v25, 2  ;;  %p649_p5 = scmp.lt.s32.totalorder (%p194_p1), %s329_s7, %s647_s17  ;;  %p650_p6 = scmp.lt.s32.totalorder (%p194_p1), %s648_s16, %s642_s29 }
  0x5c   : >> { %v237_v34 = vrot.slane %v232_v26, 2  ;;  %v250_v35 = vrot.slane %v245_v27, 3  ;;  %v251_v36 = vrot.slane %v246_v28, 3  ;;  %v260_v37 = vmul.f32 %v450_v9, %v258_v18  ;;  %p645_p13 = pneg (%p194_p1), %p644_p0 }
  0x5d   : >> { %v224_v38 = vsel %vm221_vm0, %v222_v31, %v223_v32  ;;  %v264_v39 = vrot.slane %v259_v29, 4  ;;  %v273_v40 = vmul.f32 %v449_v8, %v272_v19  ;;  %v274_v41 = vmul.f32 %v450_v9, %v272_v19  ;;  %p651_p8 = por (%p194_p1), %p650_p6, %p649_p5 }
  0x5e   : >> { %v226_v42 = vadd.f32 %v224_v38, %v212_v30  ;;  %v238_v43 = vsel %vm235_vm1, %v236_v33, %v237_v34  ;;  %v252_v44 = vsel %vm249_vm2, %v250_v35, %v251_v36  ;;  %v265_v45 = vrot.slane %v260_v37, 4 }
  0x5f   : >> { %v278_v46 = vrot.slane %v273_v40, 5  ;;  %v279_v47 = vrot.slane %v274_v41, 5  ;;  %v287_v48 = vmul.f32 %v449_v8, %v286_v20  ;;  %v288_v49 = vmul.f32 %v450_v9, %v286_v20  ;;  %p652_p7 = pnand (%p194_p1), %p651_p8, %p645_p13 }
  0x60   : >> { %v240_v50 = vadd.f32 %v238_v43, %v226_v42  ;;  %v301_v51 = vmul.f32 %v449_v8, %v300_v21  ;;  %v302_v52 = vmul.f32 %v450_v9, %v300_v21  ;;  %v266_v53 = vsel %vm263_vm3, %v264_v39, %v265_v45 }
  0x61   : >> { %v292_v54 = vrot.slane %v287_v48, 6  ;;  %v293_v55 = vrot.slane %v288_v49, 6  ;;  %v280_v57 = vsel %vm277_vm4, %v278_v46, %v279_v47 }
  0x62   : >> { %v254_v56 = vadd.f32 %v252_v44, %v240_v50  ;;  %v306_v58 = vrot.slane %v301_v51, 7  ;;  %v307_v59 = vrot.slane %v302_v52, 7 }
  0x63   : >> { %v294_v61 = vsel %vm291_vm5, %v292_v54, %v293_v55 }
  0x64   : >> { %v268_v60 = vadd.f32 %v266_v53, %v254_v56  ;;  %v308_v63 = vsel %vm305_vm6, %v306_v58, %v307_v59 }
  0x66   : >> { %v282_v62 = vadd.f32 %v280_v57, %v268_v60 }
  0x68   : >> { %v296_v0 = vadd.f32 %v294_v61, %v282_v62  ;;  %196 = sbr.rel (!%p194_p1) target bundleno = 81 (0x51), region = 87 }
  0x6a   : >> { %v310_v1 = vadd.f32 %v308_v63, %v296_v0  }
  0x6c   : >> { %v1077_v0 = vmov %v310_v1  ;;  %311 = vst [vmem:[%s190_s27] sm:$0xff] (%p194_p1), %v310_v1 }
  0x6d   : > { %655 = shalt.err (!%p652_p7)
}
  0x6e   : > { %s656_s15 = scalar_lea.hbm %s326_s8, 128  ;;  %s660_s27 = scalar_lea.hbm %s1052_s2, 512 }
  0x6f   : > { %p657_p9 = scmp.ne.s32.totalorder %s326_s8, %s656_s15  ;;  %p661_p2 = scmp.lt.s32.totalorder %s326_s8, %s1052_s2 }
  0x70   : > { %p662_p4 = scmp.lt.s32.totalorder %s660_s27, %s656_s15 }
  0x71   : > { %p658_p10 = pnand %p657_p9, %p1078_p11 }
  0x72   : > { %p663_p1 = por %p662_p4, %p661_p2 }
  0x73   : > { %p659_p12 = pneg %p658_p10 }
  0x75   : > { %p664_p3 = pnand %p663_p1, %p659_p12 }
  0x77   : > { %667 = shalt.err (!%p664_p3)
}
  0x78   : > { %463 = dma.vmem_to_hbm [thread:$0]  (%p1078_p11), %s329_s7, 128, %s326_s8, %s313_s5  }
  0x79 PF: > { %s1079_s20 = sld [smem:[#allocation11_spill]]  ;;  %p480_p0 = scmp.ge.s32.totalorder %s774_s19, 2 }
  0x7a   : > { %s1080_s12 = sld [smem:[#allocation13_spill]] }
  0x7f   : > { %s340_s23 = sand.u32 1, %s1079_s20  }
  0x80   : > { %p1081_p13 = scmp.ne.s32.totalorder %s1080_s12, 0  ;;  %s341_s0 = scalar_lea.sflag [#allocation4], %s340_s23 }
  0x82   : > { %p474_p5 = pnand %p480_p0, %p1081_p13 }
  0x84   : > { %p475_p6 = pneg %p474_p5 }
  0x86   : > { %729 = dma.done.wait (%p475_p6), %s341_s0, 128  }
  0x87   : > { %731 = vsyncadd (%p475_p6), %s341_s0, 4294967168  ;;  %s19_s19 = sadd.s32 1, %s774_s19   ;;  %s1082_s15 = sld [smem:[#allocation12_spill]] }
  0x88   : > { %p16_p8 = scmp.ge.s32.totalorder %s19_s19, 6   ;;  %s1083_s17 = sld [smem:[#allocation14_spill]] }
  0x89   : > { %s1084_s25 = sld [smem:[#allocation15_spill]]  ;;  %s1085_s9 = smov %s738_s10 }
  0x8a   : > { %s1086_s10 = smov %s742_s11  ;;  %s1087_s11 = smov %s927_s4 }
  0x8b   : > { %s1088_s12 = smov %s750_s13  ;;  %s1089_s13 = smov %s754_s14 }
  0x8c   : > { %s1090_s14 = smov %s922_s3  ;;  %s1091_s16 = smov %s770_s18 }
  0x8d   :  { %18 = sbr.rel (!%p16_p8) target bundleno = 12 (0xc), region = 98 }
  0x8f   : > { %s1092_s18 = smov %s1084_s25 }
  0x92   :  { %346 = vsyncpa [#allocation3], 1 }
  0x93   :  { %348 = vsyncpa [#allocation3 + $0x1], 1 }
  0x94   :  { %349 = vsyncpa [#allocation6], 1 }
  0x95   :  { %351 = vsyncpa [#allocation6 + $0x1], 1 }
  0x96   :  { %352 = vsyncpa [#allocation4], 1 }
  0x97   :  { %354 = vsyncpa [#allocation4 + $0x1], 1 }

</bundles_post_ra>
